<compile_context>
chip_gen: v5e
topology: v5e:2x2
jax: 0.10.0
libtpu: 0.0.40
codegen_flags: <defaults>
</compile_context>

<pallas_src>
import jax
import jax.numpy as jnp
from jax.experimental import pallas as pl
from jax.experimental.pallas import tpu as pltpu


# ~2 MiB f32 per block: x(2 MiB) + y(2 MiB) + mask(0.5 MiB) = 4.5 MiB per step,
# ~9 MiB double-buffered -> fits every generation's scoped-VMEM default.
_TARGET_BLOCK_ELEMS = 512 * 1024


def _fake_sparse_enabled_kernel(thr_ref, x_ref, y_ref, mask_ref):
    """Enabled path: write pruned activations (x * mask) and the int8 mask."""
    x = x_ref[...]
    thr = thr_ref[0, 0]                                   # f32 scalar from SMEM
    keep = jnp.abs(x).astype(jnp.float32) >= thr          # compare in f32 (PyTorch parity)
    mask_ref[...] = keep.astype(jnp.int8)
    y_ref[...] = x * keep.astype(x.dtype)                 # x * mask (NaN-propagating)


def _mask_only_kernel(thr_ref, x_ref, mask_ref):
    """Disabled path: only the mask is computed (y is the identity, no copy)."""
    thr = thr_ref[0, 0]
    mask_ref[...] = (jnp.abs(x_ref[...]).astype(jnp.float32) >= thr).astype(jnp.int8)


def _choose_lane(total):
    """Largest lane width in {1024,512,256,128} dividing total; else pad path."""
    for lane in (1024, 512, 256, 128):
        if total % lane == 0:
            return lane, False
    return 128, True


def _pick_tile_rows(rows, lane):
    """Row tile: multiple of 32, ~_TARGET_BLOCK_ELEMS elems, >= 2 grid steps."""
    if rows < 64:
        # Small input: one full-extent block (full array dims are always legal).
        return rows
    target = max(32, _TARGET_BLOCK_ELEMS // lane)
    # Cap at ~rows/2 (rounded to 32) so the parallel grid axis has >= 2 steps
    # and both v7x TensorCores get work.
    cap = max(32, (rows // 2 // 32) * 32)
    return min(target, cap)


def fake_sparse_forward(x, threshold, enabled=True):
    """FakeSparse forward.

    Args:
      x: float array (any shape, e.g. [N, C, H, W]).
      threshold: magnitude threshold (Python float or scalar array); passed to
        the kernel through SMEM, so updating it does not recompile.
      enabled: Python bool mirroring the `fake_sparse_enabled` uint8 buffer.

    Returns:
      (y, mask): y has x's shape/dtype; mask is int8 with x's shape.
    """
    orig_shape = x.shape
    dtype = x.dtype
    total = x.size
    lane, needs_pad = _choose_lane(total)

    x_flat = x.reshape(-1)
    if needs_pad:
        # TODO(synk): handle ragged tails in-kernel (manual DMA + iota mask) to
        # avoid this pad copy and the output slice copies; only hit when
        # numel(x) % 128 != 0.
        padded_total = (-(-total // lane)) * lane
        x_flat = jnp.pad(x_flat, (0, padded_total - total))
    else:
        padded_total = total
    rows = padded_total // lane
    x2d = x_flat.reshape(rows, lane)

    tile_r = _pick_tile_rows(rows, lane)
    grid = (pl.cdiv(rows, tile_r),)                 # boundary block masked by Pallas
    blk = pl.BlockSpec((tile_r, lane), lambda i: (i, 0))
    smem_spec = pl.BlockSpec(memory_space=pltpu.MemorySpace.SMEM)
    cparams = pltpu.CompilerParams(
        dimension_semantics=("parallel",),
        vmem_limit_bytes=32 << 20,
    )
    thr_arr = jnp.full((1, 1), threshold, dtype=jnp.float32)
    itemsize = jnp.dtype(dtype).itemsize

    if enabled:
        cost = pl.CostEstimate(
            flops=0, transcendentals=0,
            bytes_accessed=int(padded_total * (2 * itemsize + 1)))
        y2d, mask2d = pl.pallas_call(
            _fake_sparse_enabled_kernel,
            out_shape=(
                jax.ShapeDtypeStruct((rows, lane), dtype),
                jax.ShapeDtypeStruct((rows, lane), jnp.int8),
            ),
            grid=grid,
            in_specs=[smem_spec, blk],
            out_specs=(blk, blk),
            compiler_params=cparams,
            cost_estimate=cost,
        )(thr_arr, x2d)
        if needs_pad:
            y = y2d.reshape(-1)[:total].reshape(orig_shape)
        else:
            y = y2d.reshape(orig_shape)             # free bitcast reshape
    else:
        cost = pl.CostEstimate(
            flops=0, transcendentals=0,
            bytes_accessed=int(padded_total * (itemsize + 1)))
        mask2d = pl.pallas_call(
            _mask_only_kernel,
            out_shape=jax.ShapeDtypeStruct((rows, lane), jnp.int8),
            grid=grid,
            in_specs=[smem_spec, blk],
            out_specs=blk,
            compiler_params=cparams,
            cost_estimate=cost,
        )(thr_arr, x2d)
        y = x                                        # identity: no HBM copy at all

    if needs_pad:
        mask = mask2d.reshape(-1)[:total].reshape(orig_shape)
    else:
        mask = mask2d.reshape(orig_shape)
    return y, mask


if __name__ == "__main__":
    key = jax.random.PRNGKey(0)
    N, C, H, W = 2, 4, 16, 16
    x = jax.random.normal(key, (N, C, H, W), dtype=jnp.float32)
    threshold = 0.5

    # Enabled path (fake_sparse_enabled == 1): y = x * mask.
    y_on, mask_on = fake_sparse_forward(x, threshold, enabled=True)
    jax.block_until_ready((y_on, mask_on))

    # Disabled path (fake_sparse_enabled == 0): y = x (identity), mask still computed.
    y_off, mask_off = fake_sparse_forward(x, threshold, enabled=False)
    jax.block_until_ready((y_off, mask_off))

    # Reference check in plain JAX.
    ref_keep = jnp.abs(x) >= threshold
    ref_mask = ref_keep.astype(jnp.int8)
    ref_y = x * ref_mask.astype(x.dtype)

    assert mask_on.dtype == jnp.int8
    assert mask_on.shape == x.shape and y_on.shape == x.shape
    assert jnp.array_equal(mask_on, ref_mask)
    assert jnp.array_equal(mask_off, ref_mask)
    assert jnp.allclose(y_on, ref_y)
    assert jnp.allclose(y_off, x)

    # Exercise the ragged fallback path (numel % 128 != 0).
    x_r = jax.random.normal(jax.random.PRNGKey(1), (3, 5, 7), dtype=jnp.float32)
    y_r, m_r = fake_sparse_forward(x_r, threshold, enabled=True)
    jax.block_until_ready((y_r, m_r))
    ref_mask_r = (jnp.abs(x_r) >= threshold).astype(jnp.int8)
    assert jnp.array_equal(m_r, ref_mask_r)
    assert jnp.allclose(y_r, x_r * ref_mask_r.astype(x_r.dtype))

    print("KERNEL_OK")
</pallas_src>

<mosaic_0001>
module attributes {stable_mosaic.version = 11 : i64} {
  func.func @_fake_sparse_enabled_kernel(%arg0: i32, %arg1: memref<1x1xf32, #tpu.memory_space<smem>>, %arg2: memref<2x1024xf32, #tpu.memory_space<vmem>>, %arg3: memref<2x1024xf32, #tpu.memory_space<vmem>>, %arg4: memref<2x1024xi8, #tpu.memory_space<vmem>>) attributes {dimension_semantics = [#tpu.dimension_semantics<parallel>], iteration_bounds = array<i64: 1>, scalar_prefetch = 0 : i64, scratch_operands = 0 : i64, tpu.core_type = #tpu.core_type<tc>, window_params = [{transform_indices = @transform_0, window_bounds = array<i64: 1, 1>}, {transform_indices = @transform_1, window_bounds = array<i64: 2, 1024>}, {transform_indices = @transform_2, window_bounds = array<i64: 2, 1024>}, {transform_indices = @transform_3, window_bounds = array<i64: 2, 1024>}]} {
    %c0 = arith.constant 0 : index
    %c0_0 = arith.constant 0 : index
    %0 = vector.load %arg2[%c0, %c0_0] : memref<2x1024xf32, #tpu.memory_space<vmem>>, vector<2x1024xf32>
    %c0_1 = arith.constant 0 : index
    %c0_2 = arith.constant 0 : index
    %1 = memref.load %arg1[%c0_1, %c0_2] : memref<1x1xf32, #tpu.memory_space<smem>>
    %2 = math.absf %0 : vector<2x1024xf32>
    %3 = vector.broadcast %1 : f32 to vector<2x1024xf32>
    %4 = arith.cmpf oge, %2, %3 : vector<2x1024xf32>
    %5 = arith.extui %4 : vector<2x1024xi1> to vector<2x1024xi8>
    %c0_3 = arith.constant 0 : index
    %c0_4 = arith.constant 0 : index
    %6 = vector.load %arg4[%c0_3, %c0_4] : memref<2x1024xi8, #tpu.memory_space<vmem>>, vector<2x1024xi8>
    tpu.vector_store %arg4[%c0_3, %c0_4], %5 {strides = array<i32>} : memref<2x1024xi8, #tpu.memory_space<vmem>>, vector<2x1024xi8>,
    %7 = arith.extui %4 : vector<2x1024xi1> to vector<2x1024xi32>
    %8 = arith.sitofp %7 : vector<2x1024xi32> to vector<2x1024xf32>
    %9 = arith.mulf %0, %8 : vector<2x1024xf32>
    %c0_5 = arith.constant 0 : index
    %c0_6 = arith.constant 0 : index
    %10 = vector.load %arg3[%c0_5, %c0_6] : memref<2x1024xf32, #tpu.memory_space<vmem>>, vector<2x1024xf32>
    tpu.vector_store %arg3[%c0_5, %c0_6], %9 {strides = array<i32>} : memref<2x1024xf32, #tpu.memory_space<vmem>>, vector<2x1024xf32>,
    return
  }
  func.func @transform_0(%arg0: i32) -> (i32, i32) {
    %c0_i32 = arith.constant 0 : i32
    %c0_i32_0 = arith.constant 0 : i32
    %c0_i32_1 = arith.constant 0 : i32
    return %c0_i32, %c0_i32_0 : i32, i32
  }
  func.func @transform_1(%arg0: i32) -> (i32, i32) {
    %c0_i32 = arith.constant 0 : i32
    %c0_i32_0 = arith.constant 0 : i32
    return %arg0, %c0_i32 : i32, i32
  }
  func.func @transform_2(%arg0: i32) -> (i32, i32) {
    %c0_i32 = arith.constant 0 : i32
    %c0_i32_0 = arith.constant 0 : i32
    return %arg0, %c0_i32 : i32, i32
  }
  func.func @transform_3(%arg0: i32) -> (i32, i32) {
    %c0_i32 = arith.constant 0 : i32
    %c0_i32_0 = arith.constant 0 : i32
    return %arg0, %c0_i32 : i32, i32
  }
}

</mosaic_0001>

<bundles_post_ra>
// kernel: tpu_custom_call.1
= control target key start
LH: loop header
LB: loop body
LE: loop exit
PB: predicated region body
PF: predicated region fallthrough
CT: control target
= control target key end

     0   :  { %10 = vsyncpa [#allocation4], 0  ;;  %s396_s0 = inlined_call_operand.<no memory space> [shape: f32[1,1], index: 0, kind: input, shape index: {}]   ;;  %s397_s1 = inlined_call_operand.hbm [shape: f32[2,1024], index: 1, kind: input, shape index: {}]   ;;  %s398_s2 = inlined_call_operand.hbm [shape: f32[2,1024], index: 2, kind: output, shape index: {0}]   ;;  %s399_s3 = inlined_call_operand.hbm [shape: s8[2,1024], index: 3, kind: output, shape index: {1}]  }
   0x1   :  { %11 = vsyncpa [#allocation5], 0 }
   0x2   :  { %12 = vsyncpa [#allocation8], 0  ;;  %s20_s14 = sshll.u32 %s397_s1, 4  ;;  %s284_s15 = smov [#allocation3]   ;;  %s21_s14 = int_to_ptr.hbm [resolvable:$true] %s20_s14 }
   0x3   :  { %s22_s16 = sshll.u32 %s284_s15, 4  ;;  %s23_s16 = int_to_ptr.vmem [resolvable:$true] %s22_s16 }
   0x4   :  { %25 = dma.hbm_to_vmem [thread:$0]  %s21_s14, 256, %s23_s16, [#allocation4]  }
   0x5   :  { %278 = dma.done.wait [#allocation4], 256  }
   0x6   :  { %279 = vsyncadd [#allocation4], 4294967040  ;;  %v32_v0 = vld [vmem:[#allocation3] sm:$0xff]  ;;  %v37_v1 = vstv %s396_s0  ;;  %v33_v2 = vld [vmem:[#allocation3 + $0x8] sm:$0xff]  ;;  %v285_v5 = vmov 0   ;;  %vm401_vm2 = vcmask 1040384  }
   0x7   :  { %v35_v3 = vand.u32 2147483647, %v32_v0  ;;  %v36_v4 = vand.u32 2147483647, %v33_v2  ;;  %vm127_vm3 = vsmask.f32 256 }
   0x8   :  { %vm129_vm4 = vcmask 1041409   ;;  %vm130_vm5 = vsmask.f32 1280  ;;  %vm318_vm6 = vmand %vm401_vm2, %vm127_vm3  ;;  %v286_v9 = vmov 0.0   ;;  %s287_s0 = smov [#allocation6]   ;;  %s173_s21 = sshll.u32 %s398_s2, 4  ;;  %s174_s21 = int_to_ptr.hbm [resolvable:$true] %s173_s21 }
   0x9   :  { %vm38_vm0 = vcmp.ge.f32.partialorder %v35_v3, %v37_v1  ;;  %vm39_vm1 = vcmp.ge.f32.partialorder %v36_v4, %v37_v1  ;;  %vm322_vm7 = vmand %vm129_vm4, %vm130_vm5  ;;  %s171_s1 = sshll.u32 %s287_s0, 4  ;;  %vm400_vm8 = vcmask 1042434   ;;  %vm134_vm9 = vsmask.f32 2304  ;;  %s288_s2 = smov [#allocation7]   ;;  %v157_v59 = vld [vmem:[#allocation7] sm:$0xff]  ;;  %s172_s1 = int_to_ptr.vmem [resolvable:$true] %s171_s1 }
   0xa   :  { %v40_v6 = vsel %vm38_vm0, 1, %v285_v5  ;;  %v41_v7 = vsel %vm39_vm1, 1, %v285_v5  ;;  %v199_v10 = vsel %vm38_vm0, 1.0, %v286_v9  ;;  %v200_v11 = vsel %vm39_vm1, 1.0, %v286_v9  ;;  %vm132_vm12 = vmor %vm322_vm7, %vm318_vm6  ;;  %s182_s22 = sshll.u32 %s288_s2, 4  ;;  %s184_s25 = sshll.u32 %s399_s3, 4  ;;  %s183_s22 = int_to_ptr.vmem [resolvable:$true] %s182_s22  ;;  %s185_s25 = int_to_ptr.hbm [resolvable:$true] %s184_s25 }
   0xb   :  { %42 = vst [vmem:[#allocation1] ss:$2 sm:$0xff] %v40_v6  ;;  %v162_v13 = vmul.f32 %v199_v10, %v32_v0  ;;  %v163_v14 = vmul.f32 %v200_v11, %v33_v2  ;;  %vm137_vm10 = vcmask 1043459   ;;  %vm138_vm11 = vsmask.f32 3328  ;;  %vm135_vm13 = vmand %vm400_vm8, %vm134_vm9 }
   0xc   :  { %44 = vst [vmem:[#allocation1 + $0x10] ss:$2 sm:$0xff] %v41_v7  ;;  %vm136_vm3 = vmor %vm135_vm13, %vm132_vm12  ;;  %vm402_vm5 = vcmask 1044484   ;;  %vm142_vm9 = vsmask.f32 4352  ;;  %vm117_vm7 = vcmask 1046534  }
   0xd   :  { %164 = vst [vmem:[#allocation6] sm:$0xff] %v162_v13  ;;  %vm139_vm4 = vmand %vm137_vm10, %vm138_vm11  ;;  %vm146_vm8 = vsmask.f32 5376  ;;  %vm150_vm11 = vsmask.f32 6400  ;;  %vm153_vm13 = vcmask 1047559  }
   0xe   :  { %165 = vst [vmem:[#allocation6 + $0x8] sm:$0xff] %v163_v14 }
   0xf   :  { %176 = dma.vmem_to_hbm [thread:$0]  %s172_s1, 256, %s174_s21, [#allocation5]  }
  0x12   :  { %v45_v15 = vld.sshfl [vmem:[#allocation1] sm:$0xff pattern:$0x75643120]  ;;  %v46_v16 = vld.sshfl [vmem:[#allocation1 + $0x8] sm:$0xff pattern:$0x75643120] }
  0x13   :  { %v47_v17 = vld.sshfl [vmem:[#allocation1 + $0x10] sm:$0xff pattern:$0x75643120]  ;;  %v48_v18 = vld.sshfl [vmem:[#allocation1 + $0x18] sm:$0xff pattern:$0x75643120] }
  0x14   :  { %vm49_vm14 = vcmp.ne.s32.totalorder %v45_v15, 0  ;;  %vm50_vm15 = vcmp.ne.s32.totalorder %v46_v16, 0  ;;  %vm51_vm0 = vcmp.ne.s32.totalorder %v47_v17, 0  ;;  %vm52_vm1 = vcmp.ne.s32.totalorder %v48_v18, 0 }
  0x15   :  { %v53_v19 = vsel %vm49_vm14, 1, %v285_v5  ;;  %v54_v20 = vsel %vm50_vm15, 1, %v285_v5  ;;  %v55_v21 = vsel %vm51_vm0, 1, %v285_v5  ;;  %v56_v22 = vsel %vm52_vm1, 1, %v285_v5  ;;  %vm140_vm15 = vmor %vm139_vm4, %vm136_vm3 }
  0x16   :  { %v57_v23 = vpack.c.b16 %v54_v20, %v53_v19  ;;  %v58_v24 = vpack.c.b16 %v56_v22, %v55_v21  ;;  %vm143_vm0 = vmand %vm402_vm5, %vm142_vm9  ;;  %vm145_vm1 = vcmask 1045509   ;;  %vm154_vm9 = vsmask.f32 7424 }
  0x17   :  { %vm347_vm2 = vmor %vm143_vm0, %vm140_vm15 }
  0x18   :  { %v59_v25 = vpack.c.b8 %v58_v24, %v57_v23  ;;  %vm351_vm6 = vmand %vm145_vm1, %vm146_vm8 }
  0x19   :  { %vm148_vm10 = vmor %vm351_vm6, %vm347_vm2  ;;  %vm417_vm2 = vcmask 1044484   ;;  %vm123_vm6 = vcmask 1043456  }
  0x1a   :  { %vm60_vm14 = vnez %v59_v25  ;;  %vm151_vm1 = vmand %vm117_vm7, %vm150_vm11 }
  0x1b   :  { %v61_v26 = vsel %vm60_vm14, 16843009, %v285_v5  ;;  %vm374_vm11 = vmor %vm151_vm1, %vm148_vm10  ;;  %vm418_vm10 = vcmask 1041408  }
  0x1c   :  { %63 = vst [vmem:[#allocation1] ss:$9 sm:$0xff] %v61_v26 }
  0x23   :  { %v64_v29 = vld [vmem:[#allocation1] sm:$0xff]  ;;  %v66_v30 = vld [vmem:[#allocation1 + $0x9] sm:$0xff]  ;;  %v68_v31 = vld [vmem:[#allocation1 + $0x12] sm:$0xff] }
  0x24   :  { %v70_v32 = vld [vmem:[#allocation1 + $0x1b] sm:$0xff]  ;;  %v72_v33 = vld [vmem:[#allocation1 + $0x24] sm:$0xff]  ;;  %v74_v34 = vld [vmem:[#allocation1 + $0x2d] sm:$0xff]  ;;  %vm80_vm3 = vnez %v64_v29  ;;  %vm81_vm8 = vnez %v66_v30  ;;  %vm82_vm4 = vnez %v68_v31 }
  0x25   :  { %v76_v35 = vld [vmem:[#allocation1 + $0x36] sm:$0xff]  ;;  %v78_v36 = vld [vmem:[#allocation1 + $0x3f] sm:$0xff]  ;;  %vm83_vm14 = vnez %v70_v32  ;;  %vm84_vm15 = vnez %v72_v33  ;;  %vm85_vm0 = vnez %v74_v34  ;;  %v88_v37 = vsel %vm80_vm3, 16843009, %v285_v5 }
  0x26   :  { %vm86_vm5 = vnez %v76_v35  ;;  %vm87_vm12 = vnez %v78_v36  ;;  %v89_v38 = vsel %vm81_vm8, 16843009, %v285_v5  ;;  %v90_v39 = vsel %vm82_vm4, 16843009, %v285_v5 }
  0x27   :  { %v91_v40 = vsel %vm83_vm14, 16843009, %v285_v5  ;;  %v92_v41 = vsel %vm84_vm15, 16843009, %v285_v5  ;;  %v93_v42 = vsel %vm85_vm0, 16843009, %v285_v5 }
  0x28   :  { %v94_v43 = vsel %vm86_vm5, 16843009, %v285_v5  ;;  %v95_v44 = vsel %vm87_vm12, 16843009, %v285_v5  ;;  %v96_v45 = vrot.slane %v89_v38, 7  ;;  %v97_v46 = vrot.slane %v90_v39, 6  ;;  %vm380_vm5 = vmand %vm153_vm13, %vm154_vm9 }
  0x29   :  { %v98_v48 = vrot.slane %v91_v40, 5  ;;  %v99_v49 = vrot.slane %v92_v41, 4  ;;  %v100_v50 = vrot.slane %v93_v42, 3  ;;  %v101_v51 = vrot.slane %v94_v43, 2  ;;  %vm156_vm13 = vmor %vm380_vm5, %vm374_vm11 }
  0x2a   :  { %v102_v53 = vrot.slane %v95_v44, 1  ;;  %vm415_vm12 = vcmask 1040384   ;;  %vm121_vm3 = vcmask 1045508   ;;  %vm416_vm8 = vcmask 1042434  }
  0x2b   :  { %v106_v54 = vsel %vm415_vm12, %v88_v37, %v96_v45  ;;  %v110_v55 = vsel %vm416_vm8, %v97_v46, %v98_v48  ;;  %v116_v56 = vsel %vm417_vm2, %v99_v49, %v100_v50 }
  0x2c   :  { %v112_v57 = vsel %vm418_vm10, %v106_v54, %v110_v55  ;;  %v120_v58 = vsel %vm117_vm7, %v101_v51, %v102_v53 }
  0x2d   :  { %v122_v60 = vsel %vm121_vm3, %v116_v56, %v120_v58 }
  0x2e   :  { %v124_v61 = vsel %vm123_vm6, %v112_v57, %v122_v60 }
  0x2f   :  { %v158_v62 = vsel %vm156_vm13, %v124_v61, %v157_v59 }
  0x30   :  { %159 = vst [vmem:[#allocation7] sm:$0xff] %v158_v62 }
  0x31   :  { %187 = dma.vmem_to_hbm [thread:$0]  %s183_s22, 128, %s185_s25, [#allocation8]  }
  0x32   :  { %280 = dma.done.wait [#allocation5], 256  }
  0x33   :  { %281 = vsyncadd [#allocation5], 4294967040 }
  0x34   :  { %282 = dma.done.wait [#allocation8], 128  }
  0x35   :  { %283 = vsyncadd [#allocation8], 4294967168 }
  0x36   :  { %196 = vsyncpa [#allocation4], 1 }
  0x37   :  { %197 = vsyncpa [#allocation5], 1 }
  0x38   :  { %198 = vsyncpa [#allocation8], 1 }

</bundles_post_ra>
